<compile_context>
chip_gen: v7x
topology: tpu7x:2x2x1
jax: 0.10.0
libtpu: 0.0.40
codegen_flags: <defaults>
</compile_context>

<pallas_src>
import functools

import jax
import jax.numpy as jnp
from jax.experimental import pallas as pl
from jax.experimental.pallas import tpu as pltpu


def _round_up(x, m):
    return ((x + m - 1) // m) * m


def _vmem_capacity_bytes():
    """Physical VMEM of the local TPU; conservative fallback if unknown."""
    try:
        return int(pltpu.get_tpu_info().vmem_capacity_bytes)
    except Exception:  # noqa: BLE001 - older jax / no TPU info available
        return 64 * 1024 * 1024  # v7x per-TensorCore VMEM (smallest of the gens)


def _estimate_vmem_bytes(tm, tf, e_pad, comp_isz, out_isz, separate_acc):
    """Double-buffered working-set estimate for one grid step."""
    dbuf = 2  # BlockSpec default double-buffering
    total = (dbuf * tm * e_pad * comp_isz       # x tile
             + dbuf * e_pad * tf * comp_isz     # w1 tile
             + dbuf * tf * 4                    # b1 tile (f32)
             + dbuf * tf * e_pad * comp_isz     # w2 tile
             + dbuf * e_pad * 4                 # b2 (f32)
             + dbuf * tm * e_pad * out_isz)     # output tile
    if separate_acc:
        total += tm * e_pad * 4                 # f32 accumulator scratch
    return total


_TM_CANDIDATES = (1024, 512, 256, 128, 64, 32, 16)   # prefer big row tiles
_TF_CANDIDATES = (1024, 512, 256, 128)               # hidden-dim tile


def _ffn_kernel(x_ref, w1_ref, b1_ref, w2_ref, b2_ref, o_ref, *scratch,
                sub, n_sub):
    """One (row tile i, F tile j) step of relu(x @ w1 + b1) @ w2 + b2.

    The F tile is processed in `n_sub` static sub-chunks of `sub` columns so
    the f32 intermediate of the first matmul stays small.
    """
    acc_ref = scratch[0] if scratch else o_ref   # f32 accumulator (scratch or out)
    j = pl.program_id(1)

    x = x_ref[...]                               # (tm, e_pad) compute dtype

    def partial_product(start):
        # First linear for this sub-chunk: (tm, E) @ (E, sub), f32 accumulation.
        w1_k = w1_ref[:, start:start + sub]
        b1_k = b1_ref[:, start:start + sub]
        h = jnp.dot(x, w1_k, preferred_element_type=jnp.float32)
        h = jnp.maximum(h + b1_k.astype(jnp.float32), 0.0)
        # Second linear: partial (tm, e_pad) contribution of this sub-chunk.
        w2_k = w2_ref[start:start + sub, :]
        return jnp.dot(h.astype(w2_k.dtype), w2_k,
                       preferred_element_type=jnp.float32)

    # First sub-chunk: assign on the very first reduction step (no zero-fill),
    # accumulate otherwise.
    p0 = partial_product(0)

    @pl.when(j == 0)
    def _():
        acc_ref[...] = p0

    @pl.when(j != 0)
    def _():
        acc_ref[...] += p0

    # Remaining sub-chunks: each one is bounded by the store into acc_ref.
    for k in range(1, n_sub):
        acc_ref[...] += partial_product(k * sub)

    @pl.when(j == pl.num_programs(1) - 1)
    def _():
        out = acc_ref[...] + b2_ref[...].astype(jnp.float32)
        o_ref[...] = out.astype(o_ref.dtype)


def prepare_ffn_params(w1, b1, w2, b2, *, compute_dtype=jnp.bfloat16):
    """Pad/cast the weights once (hoisted out of the per-call hot path).

    w1: (E, F), b1: (F,), w2: (F, E), b2: (E,)  (already (in, out) layout).
    """
    E, F = w1.shape
    assert w2.shape == (F, E) and b1.shape == (F,) and b2.shape == (E,)

    e_pad = _round_up(E, 128)
    f128 = _round_up(F, 128)
    comp_isz = jnp.dtype(compute_dtype).itemsize

    vmem_cap = _vmem_capacity_bytes()
    budget = int(0.60 * vmem_cap)

    # Pick the hidden-dim tile from the VMEM budget (nominal tm=256,
    # conservative f32 output + separate accumulator).
    tf_eff = min(128, f128)
    for tf in _TF_CANDIDATES:
        tf_c = min(tf, f128)
        if _estimate_vmem_bytes(256, tf_c, e_pad, comp_isz, 4, True) <= budget:
            tf_eff = tf_c
            break
    f_pad = _round_up(f128, tf_eff)

    def pad2(a, rows, cols):
        if a.shape == (rows, cols):
            return a
        return jnp.pad(a, ((0, rows - a.shape[0]), (0, cols - a.shape[1])))

    w1_p = pad2(w1, e_pad, f_pad).astype(compute_dtype)
    w2_p = pad2(w2, f_pad, e_pad).astype(compute_dtype)
    b1_p = jnp.pad(b1, (0, f_pad - F)).astype(jnp.float32).reshape(1, f_pad)
    b2_p = jnp.pad(b2, (0, e_pad - E)).astype(jnp.float32).reshape(1, e_pad)

    return dict(w1=w1_p, b1=b1_p, w2=w2_p, b2=b2_p,
                E=E, F=F, e_pad=e_pad, f_pad=f_pad, tf=tf_eff,
                compute_dtype=compute_dtype, vmem_cap=vmem_cap, budget=budget)


def feed_forward(x, params):
    """relu(x @ w1 + b1) @ w2 + b2 for x of shape (..., E)."""
    E = params["E"]
    e_pad, f_pad, tf_eff = params["e_pad"], params["f_pad"], params["tf"]
    compute_dtype = params["compute_dtype"]
    comp_isz = jnp.dtype(compute_dtype).itemsize

    lead = x.shape[:-1]
    M = 1
    for d in lead:
        M *= d
    x2 = x.reshape(M, x.shape[-1])
    out_dtype = x.dtype
    out_isz = jnp.dtype(out_dtype).itemsize

    # f32 outputs: accumulate directly into the resident output block.
    acc_in_out = (jnp.dtype(out_dtype) == jnp.dtype(jnp.float32))

    # Row tile: as large as the VMEM budget allows (cuts weight re-streaming),
    # multiple of 16 for bf16 sublane packing.
    budget = params["budget"]
    m16 = _round_up(M, 16)
    tm_eff = min(16, m16)
    for tm in _TM_CANDIDATES:
        tm_c = min(tm, m16)
        if _estimate_vmem_bytes(tm_c, tf_eff, e_pad, comp_isz, out_isz,
                                not acc_in_out) <= budget:
            tm_eff = tm_c
            break
    m_pad = _round_up(M, tm_eff)

    # Pad activations (zeros are numerically inert for this FFN) and cast.
    if (m_pad, e_pad) != (M, E):
        x_p = jnp.pad(x2, ((0, m_pad - M), (0, e_pad - E)))
    else:
        x_p = x2
    x_p = x_p.astype(compute_dtype)

    grid = (m_pad // tm_eff, f_pad // tf_eff)
    n_row_tiles = grid[0]

    est = _estimate_vmem_bytes(tm_eff, tf_eff, e_pad, comp_isz, out_isz,
                               not acc_in_out)
    vmem_cap = params["vmem_cap"]
    # Never request more than ~85% of physical VMEM (v7x has only 64 MiB).
    vmem_limit = int(min(int(0.85 * vmem_cap),
                         max(32 * 1024 * 1024, int(1.35 * est), est)))

    cost = pl.CostEstimate(
        flops=4 * m_pad * e_pad * f_pad,  # two matmuls, 2 flops per MAC
        transcendentals=0,
        bytes_accessed=int(
            x_p.size * comp_isz
            + n_row_tiles * (params["w1"].size + params["w2"].size) * comp_isz
            + n_row_tiles * (params["b1"].size + params["b2"].size) * 4
            + m_pad * e_pad * out_isz),
    )

    sub = min(tf_eff, 256)
    n_sub = tf_eff // sub
    kernel = functools.partial(_ffn_kernel, sub=sub, n_sub=n_sub)

    scratch = [] if acc_in_out else [pltpu.VMEM((tm_eff, e_pad), jnp.float32)]

    out_padded = pl.pallas_call(
        kernel,
        out_shape=jax.ShapeDtypeStruct((m_pad, e_pad), out_dtype),
        grid_spec=pltpu.PrefetchScalarGridSpec(
            num_scalar_prefetch=0,
            grid=grid,
            in_specs=[
                # activations: tiled over rows, constant across the F axis
                pl.BlockSpec((tm_eff, e_pad), lambda i, j: (i, 0)),
                # w1: one F tile of columns per reduction step
                pl.BlockSpec((e_pad, tf_eff), lambda i, j: (0, j)),
                # b1: matching F tile
                pl.BlockSpec((1, tf_eff), lambda i, j: (0, j)),
                # w2: one F tile of rows per reduction step
                pl.BlockSpec((tf_eff, e_pad), lambda i, j: (j, 0)),
                # b2: tiny, resident
                pl.BlockSpec((1, e_pad), lambda i, j: (0, 0)),
            ],
            out_specs=pl.BlockSpec((tm_eff, e_pad), lambda i, j: (i, 0)),
            scratch_shapes=scratch,
        ),
        compiler_params=pltpu.CompilerParams(
            dimension_semantics=("parallel", "arbitrary"),
            vmem_limit_bytes=vmem_limit,
        ),
        cost_estimate=cost,
    )(x_p, params["w1"], params["b1"], params["w2"], params["b2"])

    out = out_padded[:M, :E]
    return out.reshape(*lead, E)


def ffn_reference(x, w1, b1, w2, b2, compute_dtype=jnp.bfloat16):
    """Pure-JAX reference using the same bf16-operand / f32-accum recipe."""
    h = jnp.dot(x.astype(compute_dtype), w1.astype(compute_dtype),
                preferred_element_type=jnp.float32)
    h = jnp.maximum(h + b1.astype(jnp.float32), 0.0)
    out = jnp.dot(h.astype(compute_dtype), w2.astype(compute_dtype),
                  preferred_element_type=jnp.float32)
    return (out + b2.astype(jnp.float32)).astype(x.dtype)


def init_linear_params(key, in_features, out_features, dtype=jnp.float32):
    """Matches nn.Linear init: uniform(-1/sqrt(in), 1/sqrt(in)); stored (in, out)."""
    k_w, k_b = jax.random.split(key)
    bound = 1.0 / (in_features ** 0.5)
    w = jax.random.uniform(k_w, (in_features, out_features), dtype,
                           minval=-bound, maxval=bound)
    b = jax.random.uniform(k_b, (out_features,), dtype,
                           minval=-bound, maxval=bound)
    return w, b


if __name__ == "__main__":
    # Small shapes consistent with the module: batch=2, seq=8, E=32, F=64.
    batch, seq = 2, 8
    embedding_size, feed_forward_size = 32, 64

    key = jax.random.PRNGKey(0)
    k_x, k_l1, k_l2 = jax.random.split(key, 3)

    x = jax.random.normal(k_x, (batch, seq, embedding_size), jnp.float32)
    w1, b1 = init_linear_params(k_l1, embedding_size, feed_forward_size)
    w2, b2 = init_linear_params(k_l2, feed_forward_size, embedding_size)

    # Weight padding / casting hoisted out of the hot path (done once).
    params = prepare_ffn_params(w1, b1, w2, b2)

    out = feed_forward(x, params)
    out = jax.block_until_ready(out)

    # Reference check (same bf16-operand / f32-accum recipe as the kernel).
    ref = ffn_reference(x.reshape(-1, embedding_size), w1, b1, w2, b2)
    ref = ref.reshape(batch, seq, embedding_size)
    assert out.shape == x.shape
    assert jnp.allclose(out, ref, atol=2e-2, rtol=2e-2), "mismatch vs reference"

    print("KERNEL_OK")
</pallas_src>

<mosaic_0001>
module attributes {stable_mosaic.version = 11 : i64} {
  func.func @_ffn_kernel(%arg0: i32, %arg1: i32, %arg2: memref<16x128xbf16, #tpu.memory_space<vmem>>, %arg3: memref<128x128xbf16, #tpu.memory_space<vmem>>, %arg4: memref<1x128xf32, #tpu.memory_space<vmem>>, %arg5: memref<128x128xbf16, #tpu.memory_space<vmem>>, %arg6: memref<1x128xf32, #tpu.memory_space<vmem>>, %arg7: memref<16x128xf32, #tpu.memory_space<vmem>>) attributes {dimension_semantics = [#tpu.dimension_semantics<parallel>, #tpu.dimension_semantics<arbitrary>], iteration_bounds = array<i64: 1, 1>, scalar_prefetch = 0 : i64, scratch_operands = 0 : i64, tpu.core_type = #tpu.core_type<tc>, window_params = [{transform_indices = @transform_0, window_bounds = array<i64: 16, 128>}, {transform_indices = @transform_1, window_bounds = array<i64: 128, 128>}, {transform_indices = @transform_2, window_bounds = array<i64: 1, 128>}, {transform_indices = @transform_3, window_bounds = array<i64: 128, 128>}, {pipeline_mode = #tpu.pipeline_mode<synchronous>, transform_indices = @transform_4, window_bounds = array<i64: 1, 128>}, {transform_indices = @transform_5, window_bounds = array<i64: 16, 128>}]} {
    %c0 = arith.constant 0 : index
    %c0_0 = arith.constant 0 : index
    %0 = vector.load %arg2[%c0, %c0_0] : memref<16x128xbf16, #tpu.memory_space<vmem>>, vector<16x128xbf16>
    %c0_1 = arith.constant 0 : index
    %c0_2 = arith.constant 0 : index
    %1 = vector.load %arg3[%c0_1, %c0_2] : memref<128x128xbf16, #tpu.memory_space<vmem>>, vector<128x128xbf16>
    %c0_3 = arith.constant 0 : index
    %c0_4 = arith.constant 0 : index
    %2 = vector.load %arg4[%c0_3, %c0_4] : memref<1x128xf32, #tpu.memory_space<vmem>>, vector<1x128xf32>
    %cst = arith.constant dense<0.000000e+00> : vector<16x128xf32>
    %3 = tpu.matmul %0, %1, %cst {dimension_numbers = #tpu.dot_dimension_numbers<[1], [0], [0], [1], [0, 0, 1, 1], [], []>} : vector<16x128xbf16>, vector<128x128xbf16>, vector<16x128xf32> -> vector<16x128xf32>
    %4 = vector.broadcast %2 : vector<1x128xf32> to vector<16x128xf32>
    %5 = arith.addf %3, %4 : vector<16x128xf32>
    %cst_5 = arith.constant 0.000000e+00 : f32
    %6 = vector.broadcast %cst_5 : f32 to vector<16x128xf32>
    %7 = arith.maximumf %5, %6 : vector<16x128xf32>
    %c0_6 = arith.constant 0 : index
    %c0_7 = arith.constant 0 : index
    %8 = vector.load %arg5[%c0_6, %c0_7] : memref<128x128xbf16, #tpu.memory_space<vmem>>, vector<128x128xbf16>
    %9 = arith.truncf %7 : vector<16x128xf32> to vector<16x128xbf16>
    %cst_8 = arith.constant dense<0.000000e+00> : vector<16x128xf32>
    %10 = tpu.matmul %9, %8, %cst_8 {dimension_numbers = #tpu.dot_dimension_numbers<[1], [0], [0], [1], [0, 0, 1, 1], [], []>} : vector<16x128xbf16>, vector<128x128xbf16>, vector<16x128xf32> -> vector<16x128xf32>
    %c0_i32 = arith.constant 0 : i32
    %11 = arith.cmpi eq, %arg1, %c0_i32 : i32
    %12 = arith.extui %11 : i1 to i32
    %c0_i32_9 = arith.constant 0 : i32
    %13 = arith.cmpi ne, %12, %c0_i32_9 : i32
    scf.if %13 {
      %c0_14 = arith.constant 0 : index
      %c0_15 = arith.constant 0 : index
      %20 = vector.load %arg7[%c0_14, %c0_15] : memref<16x128xf32, #tpu.memory_space<vmem>>, vector<16x128xf32>
      tpu.vector_store %arg7[%c0_14, %c0_15], %10 {strides = array<i32>} : memref<16x128xf32, #tpu.memory_space<vmem>>, vector<16x128xf32>,
    } else {
    }
    %c0_i32_10 = arith.constant 0 : i32
    %14 = arith.cmpi ne, %arg1, %c0_i32_10 : i32
    %15 = arith.extui %14 : i1 to i32
    %c0_i32_11 = arith.constant 0 : i32
    %16 = arith.cmpi ne, %15, %c0_i32_11 : i32
    scf.if %16 {
      %c0_14 = arith.constant 0 : index
      %c0_15 = arith.constant 0 : index
      %20 = vector.load %arg7[%c0_14, %c0_15] : memref<16x128xf32, #tpu.memory_space<vmem>>, vector<16x128xf32>
      %21 = arith.addf %20, %10 : vector<16x128xf32>
      %c0_16 = arith.constant 0 : index
      %c0_17 = arith.constant 0 : index
      %22 = vector.load %arg7[%c0_16, %c0_17] : memref<16x128xf32, #tpu.memory_space<vmem>>, vector<16x128xf32>
      tpu.vector_store %arg7[%c0_16, %c0_17], %21 {strides = array<i32>} : memref<16x128xf32, #tpu.memory_space<vmem>>, vector<16x128xf32>,
    } else {
    }
    %c0_i32_12 = arith.constant 0 : i32
    %17 = arith.cmpi eq, %arg1, %c0_i32_12 : i32
    %18 = arith.extui %17 : i1 to i32
    %c0_i32_13 = arith.constant 0 : i32
    %19 = arith.cmpi ne, %18, %c0_i32_13 : i32
    scf.if %19 {
      %c0_14 = arith.constant 0 : index
      %c0_15 = arith.constant 0 : index
      %20 = vector.load %arg7[%c0_14, %c0_15] : memref<16x128xf32, #tpu.memory_space<vmem>>, vector<16x128xf32>
      %c0_16 = arith.constant 0 : index
      %c0_17 = arith.constant 0 : index
      %21 = vector.load %arg6[%c0_16, %c0_17] : memref<1x128xf32, #tpu.memory_space<vmem>>, vector<1x128xf32>
      %22 = vector.broadcast %21 : vector<1x128xf32> to vector<16x128xf32>
      %23 = arith.addf %20, %22 : vector<16x128xf32>
      %c0_18 = arith.constant 0 : index
      %c0_19 = arith.constant 0 : index
      %24 = vector.load %arg7[%c0_18, %c0_19] : memref<16x128xf32, #tpu.memory_space<vmem>>, vector<16x128xf32>
      tpu.vector_store %arg7[%c0_18, %c0_19], %23 {strides = array<i32>} : memref<16x128xf32, #tpu.memory_space<vmem>>, vector<16x128xf32>,
    } else {
    }
    return
  }
  func.func @transform_0(%arg0: i32, %arg1: i32) -> (i32, i32) {
    %c0_i32 = arith.constant 0 : i32
    %c0_i32_0 = arith.constant 0 : i32
    return %arg0, %c0_i32 : i32, i32
  }
  func.func @transform_1(%arg0: i32, %arg1: i32) -> (i32, i32) {
    %c0_i32 = arith.constant 0 : i32
    %c0_i32_0 = arith.constant 0 : i32
    return %c0_i32, %arg1 : i32, i32
  }
  func.func @transform_2(%arg0: i32, %arg1: i32) -> (i32, i32) {
    %c0_i32 = arith.constant 0 : i32
    %c0_i32_0 = arith.constant 0 : i32
    return %c0_i32, %arg1 : i32, i32
  }
  func.func @transform_3(%arg0: i32, %arg1: i32) -> (i32, i32) {
    %c0_i32 = arith.constant 0 : i32
    %c0_i32_0 = arith.constant 0 : i32
    return %arg1, %c0_i32 : i32, i32
  }
  func.func @transform_4(%arg0: i32, %arg1: i32) -> (i32, i32) {
    %c0_i32 = arith.constant 0 : i32
    %c0_i32_0 = arith.constant 0 : i32
    %c0_i32_1 = arith.constant 0 : i32
    return %c0_i32, %c0_i32_0 : i32, i32
  }
  func.func @transform_5(%arg0: i32, %arg1: i32) -> (i32, i32) {
    %c0_i32 = arith.constant 0 : i32
    %c0_i32_0 = arith.constant 0 : i32
    return %arg0, %c0_i32 : i32, i32
  }
}

</mosaic_0001>

<bundles_post_ra>
// kernel: tpu_custom_call.1
= control target key start
LH: loop header
LB: loop body
LE: loop exit
PB: predicated region body
PF: predicated region fallthrough
CT: control target
= control target key end

     0   :  { %10 = vsyncpa [#allocation3], 0  ;;  %s649_s0 = inlined_call_operand.hbm [shape: bf16[16,128], index: 0, kind: input, shape index: {}]   ;;  %s650_s1 = inlined_call_operand.hbm [shape: bf16[128,128], index: 1, kind: input, shape index: {}]   ;;  %s651_s2 = inlined_call_operand.vmem [shape: f32[1,128], index: 2, kind: input, shape index: {}]   ;;  %s652_s3 = inlined_call_operand.hbm [shape: bf16[128,128], index: 3, kind: input, shape index: {}]   ;;  %s653_s4 = inlined_call_operand.vmem [shape: f32[1,128], index: 4, kind: input, shape index: {}]   ;;  %s654_s5 = inlined_call_operand.hbm [shape: f32[16,128], index: 5, kind: output, shape index: {}]  }
   0x1   :  { %11 = vsyncpa [#allocation6], 0 }
   0x2   :  { %12 = vsyncpa [#allocation4], 0  ;;  %s539_s18 = smov [#allocation5]   ;;  %s540_s20 = smov [#allocation2]  }
   0x3   :  { %s30_s19 = sshll.u32 %s539_s18, 4  ;;  %s18_s21 = sshll.u32 %s540_s20, 4  ;;  %s31_s19 = int_to_ptr.vmem [resolvable:$true] %s30_s19  ;;  %s579_s21 = int_to_ptr.vmem [resolvable:$true] %s18_s21 }
   0x4   :  { %s445_s24 = scalar_lea.hbm %s650_s1, 1024 }
   0x5   :  { %p446_p0 = scmp.ne.s32.totalorder %s650_s1, %s445_s24  ;;  %p449_p1 = scmp.lt.u32.totalorder %s445_s24, %s650_s1 }
   0x7   :  { %p451_p2 = pnand %p449_p1, %p446_p0 }
   0x9   :  { %454 = shalt.err (!%p451_p2)
}
   0xa   :  { %s455_s29 = scalar_lea.vmem %s31_s19, 1024  ;;  %p460_p4 = scmp.lt.s32.totalorder %s31_s19, %s31_s19 }
   0xb   :  { %p456_p3 = scmp.ne.s32.totalorder %s31_s19, %s455_s29  ;;  %p461_p5 = scmp.lt.s32.totalorder %s455_s29, %s455_s29 }
   0xd   :  { %p462_p6 = por %p461_p5, %p460_p4 }
   0xf   :  { %p463_p7 = pnand %p462_p6, %p456_p3 }
  0x11   :  { %466 = shalt.err (!%p463_p7)
}
  0x12   :  { %s541_s30 = smov 64   ;;  %s542_s6 = smov 4  }
  0x13   :  { %36 = dma.hbm_to_vmem [thread:$0]  %s650_s1, 1024, %s31_s19, [#allocation6], %s541_s30, %s541_s30, %s542_s6  }
  0x14   :  { %s467_s11 = scalar_lea.hbm %s649_s0, 128 }
  0x15   :  { %p468_p8 = scmp.ne.s32.totalorder %s649_s0, %s467_s11  ;;  %p471_p9 = scmp.lt.u32.totalorder %s467_s11, %s649_s0 }
  0x17   :  { %p473_p10 = pnand %p471_p9, %p468_p8 }
  0x19   :  { %476 = shalt.err (!%p473_p10)
}
  0x1a   :  { %s477_s16 = scalar_lea.vmem %s579_s21, 128  ;;  %p482_p12 = scmp.lt.s32.totalorder %s579_s21, %s579_s21 }
  0x1b   :  { %p478_p11 = scmp.ne.s32.totalorder %s579_s21, %s477_s16  ;;  %p483_p13 = scmp.lt.s32.totalorder %s477_s16, %s477_s16 }
  0x1d   :  { %p484_p0 = por %p483_p13, %p482_p12 }
  0x1f   :  { %p485_p1 = pnand %p484_p0, %p478_p11 }
  0x21   :  { %488 = shalt.err (!%p485_p1)
}
  0x22   :  { %24 = dma.hbm_to_vmem [thread:$0]  %s649_s0, 128, %s579_s21, [#allocation3], %s541_s30, %s541_s30, %s542_s6  }
  0x23   :  { %s543_s18 = smov [#allocation7]   ;;  %s489_s23 = scalar_lea.hbm %s652_s3, 1024 }
  0x24   :  { %s44_s19 = sshll.u32 %s543_s18, 4  ;;  %p490_p2 = scmp.ne.s32.totalorder %s652_s3, %s489_s23  ;;  %s45_s19 = int_to_ptr.vmem [resolvable:$true] %s44_s19 }
  0x25   :  { %p493_p3 = scmp.lt.u32.totalorder %s489_s23, %s652_s3 }
  0x27   :  { %p495_p4 = pnand %p493_p3, %p490_p2 }
  0x29   :  { %498 = shalt.err (!%p495_p4)
}
  0x2a   :  { %s499_s28 = scalar_lea.vmem %s45_s19, 1024  ;;  %p504_p6 = scmp.lt.s32.totalorder %s45_s19, %s45_s19 }
  0x2b   :  { %p500_p5 = scmp.ne.s32.totalorder %s45_s19, %s499_s28  ;;  %p505_p7 = scmp.lt.s32.totalorder %s499_s28, %s499_s28 }
  0x2d   :  { %p506_p8 = por %p505_p7, %p504_p6 }
  0x2f   :  { %p507_p9 = pnand %p506_p8, %p500_p5 }
  0x31   :  { %510 = shalt.err (!%p507_p9)
}
  0x32   :  { %50 = dma.hbm_to_vmem [thread:$0]  %s652_s3, 1024, %s45_s19, [#allocation6], %s541_s30, %s541_s30, %s542_s6  }
  0x33   :  { %533 = dma.done.wait [#allocation3], 128  }
  0x34   :  { %534 = vsyncadd [#allocation3], 4294967168 }
  0x35   :  { %535 = dma.done.wait [#allocation6], 2048  }
  0x36   :  { %536 = vsyncadd [#allocation6], 4294965248  ;;  %v544_v0 = vmov 0.0   ;;  %vm545_vm0 = vmmov 0   ;;  %v428_v1 = vld [vmem:[#allocation5] sm:$0xff]   ;;  %v429_v2 = vld [vmem:[#allocation5 + $0x8] sm:$0xff]  }
  0x37   :  { %378 = vmatprep.subr.bf16.mxu0 %v544_v0  ;;  %394 = vmatprep.mubr.msk.bf16.mxu0 %vm545_vm0, %v544_v0  ;;  %v430_v3 = vld [vmem:[#allocation5 + $0x10] sm:$0xff]   ;;  %v437_v4 = vld [vmem:[#allocation7] sm:$0xff]   ;;  %v431_v5 = vld [vmem:[#allocation5 + $0x18] sm:$0xff]   ;;  %s546_s7 = smov [#allocation8]  }
  0x38   :  { %398 = vmatprep.subr.bf16.mxu1 %v544_v0  ;;  %414 = vmatprep.mubr.msk.bf16.mxu1 %vm545_vm0, %v544_v0  ;;  %v438_v6 = vld [vmem:[#allocation7 + $0x8] sm:$0xff]   ;;  %v432_v7 = vld [vmem:[#allocation5 + $0x20] sm:$0xff]   ;;  %v439_v8 = vld [vmem:[#allocation7 + $0x10] sm:$0xff]   ;;  %s328_s8 = sshll.u32 %s546_s7, 4  ;;  %s329_s8 = int_to_ptr.vmem [resolvable:$true] %s328_s8 }
  0x39   :  { %379 = vmatpush3.bf16.msra.mxu0 %v428_v1  ;;  %399 = vmatpush3.bf16.msra.mxu1 %v437_v4  ;;  %v433_v9 = vld [vmem:[#allocation5 + $0x28] sm:$0xff]   ;;  %v440_v10 = vld [vmem:[#allocation7 + $0x18] sm:$0xff]   ;;  %v434_v11 = vld [vmem:[#allocation5 + $0x30] sm:$0xff]   ;;  %p516_p11 = scmp.lt.s32.totalorder %s329_s8, %s329_s8 }
  0x3a   :  { %380 = vmatprep.subr.bf16.mxu0 %v544_v0  ;;  %400 = vmatprep.subr.bf16.mxu1 %v544_v0  ;;  %v441_v12 = vld [vmem:[#allocation7 + $0x20] sm:$0xff]   ;;  %v435_v13 = vld [vmem:[#allocation5 + $0x38] sm:$0xff]   ;;  %v442_v14 = vld [vmem:[#allocation7 + $0x28] sm:$0xff]  }
  0x3b   :  { %v436_v15 = vld [vmem:[#allocation2] sm:$0xff]   ;;  %v443_v16 = vld [vmem:[#allocation7 + $0x30] sm:$0xff]  }
  0x3c   :  { %v444_v17 = vld [vmem:[#allocation7 + $0x38] sm:$0xff]  }
  0x3d   :  { %381 = vmatpush3.bf16.msra.mxu0 %v429_v2  ;;  %401 = vmatpush3.bf16.msra.mxu1 %v438_v6  ;;  %v341_v18 = vld [vmem:[%s651_s2] ss:$0 sm:$0xff]  ;;  %s511_s2 = scalar_lea.vmem %s329_s8, 256 }
  0x3e   :  { %382 = vmatprep.subr.bf16.mxu0 %v544_v0  ;;  %402 = vmatprep.subr.bf16.mxu1 %v544_v0  ;;  %v359_v28 = vld [vmem:[%s653_s4] ss:$0 sm:$0xff]  ;;  %p512_p10 = scmp.ne.s32.totalorder %s329_s8, %s511_s2  ;;  %p517_p12 = scmp.lt.s32.totalorder %s511_s2, %s511_s2 }
  0x40   :  { %p518_p13 = por %p517_p12, %p516_p11 }
  0x41   :  { %383 = vmatpush3.bf16.msra.mxu0 %v430_v3  ;;  %403 = vmatpush3.bf16.msra.mxu1 %v439_v8 }
  0x42   :  { %384 = vmatprep.subr.bf16.mxu0 %v544_v0  ;;  %404 = vmatprep.subr.bf16.mxu1 %v544_v0  ;;  %p519_p0 = pnand %p518_p13, %p512_p10 }
  0x45   :  { %385 = vmatpush3.bf16.msra.mxu0 %v431_v5  ;;  %405 = vmatpush3.bf16.msra.mxu1 %v440_v10 }
  0x46   :  { %386 = vmatprep.subr.bf16.mxu0 %v544_v0  ;;  %406 = vmatprep.subr.bf16.mxu1 %v544_v0 }
  0x49   :  { %387 = vmatpush3.bf16.msra.mxu0 %v432_v7  ;;  %407 = vmatpush3.bf16.msra.mxu1 %v441_v12 }
  0x4a   :  { %388 = vmatprep.subr.bf16.mxu0 %v544_v0  ;;  %408 = vmatprep.subr.bf16.mxu1 %v544_v0 }
  0x4d   :  { %389 = vmatpush3.bf16.msra.mxu0 %v433_v9  ;;  %409 = vmatpush3.bf16.msra.mxu1 %v442_v14 }
  0x4e   :  { %390 = vmatprep.subr.bf16.mxu0 %v544_v0  ;;  %410 = vmatprep.subr.bf16.mxu1 %v544_v0 }
  0x51   :  { %391 = vmatpush3.bf16.msra.mxu0 %v434_v11  ;;  %411 = vmatpush3.bf16.msra.mxu1 %v443_v16 }
  0x52   :  { %392 = vmatprep.subr.bf16.mxu0 %v544_v0  ;;  %412 = vmatprep.subr.bf16.mxu1 %v544_v0 }
  0x55   :  { %393 = vmatpush3.bf16.msra.mxu0 %v435_v13  ;;  %413 = vmatpush3.bf16.msra.mxu1 %v444_v17 }
  0x58   :  { %395 = vmatmul.mubr.bf16.vlgmr.msra.gmra.mrb[0].mxu0 %v436_v15 }
 0x12b   :  { %v176_v19 = vpop.f32.mrb[0].mxu0 }
 0x12c   :  { %v177_v20 = vadd.f32 %v341_v18, %v176_v19  ;;  %v396_v21 = vpop.f32.mrb[1].mxu0 }
 0x12d   :  { %v179_v22 = vpop.f32.mrb[2].mxu0 }
 0x12e   :  { %v180_v23 = vadd.f32 %v341_v18, %v179_v22  ;;  %v397_v24 = vpop.f32.mrb[3].mxu0  ;;  %v183_v25 = vmax.f32 %v177_v20, 0.0 }
 0x130   :  { %v184_v26 = vmax.f32 %v180_v23, 0.0 }
 0x132   :  { %v201_v27 = vpack.c.bf16 %v184_v26, %v183_v25 }
 0x134   :  { %415 = vmatmul.mubr.bf16.vlgmr.msra.gmra.mrb[0].mxu1 %v201_v27 }
 0x207   :  { %v284_v29 = vpop.f32.mrb[0].mxu1 }
 0x208   :  { %v319_v30 = vadd.f32 %v359_v28, %v284_v29  ;;  %v416_v31 = vpop.f32.mrb[1].mxu1 }
 0x209   :  { %v287_v32 = vpop.f32.mrb[2].mxu1 }
 0x20a   :  { %321 = vst [vmem:[#allocation8] sm:$0xff] %v319_v30  ;;  %v320_v33 = vadd.f32 %v359_v28, %v287_v32  ;;  %v417_v34 = vpop.f32.mrb[3].mxu1 }
 0x20c   :  { %322 = vst [vmem:[#allocation8 + $0x8] sm:$0xff] %v320_v33 }
 0x20d   :  { %522 = shalt.err (!%p519_p0)
}
 0x20e   :  { %s523_s10 = scalar_lea.hbm %s654_s5, 256 }
 0x20f   :  { %p524_p1 = scmp.ne.s32.totalorder %s654_s5, %s523_s10  ;;  %p527_p2 = scmp.lt.u32.totalorder %s523_s10, %s654_s5 }
 0x211   :  { %p529_p3 = pnand %p527_p2, %p524_p1 }
 0x213   :  { %532 = shalt.err (!%p529_p3)
}
 0x214   :  { %s547_s15 = smov 128   ;;  %s548_s16 = smov 8  }
 0x215   :  { %334 = dma.vmem_to_hbm [thread:$0]  %s329_s8, 256, %s654_s5, [#allocation4], %s547_s15, %s547_s15, %s548_s16  }
 0x216   :  { %537 = dma.done.wait [#allocation4], 256  }
 0x217   :  { %538 = vsyncadd [#allocation4], 4294967040 }
 0x218   :  { %338 = vsyncpa [#allocation3], 1 }
 0x219   :  { %339 = vsyncpa [#allocation6], 1 }
 0x21a   :  { %340 = vsyncpa [#allocation4], 1 }

</bundles_post_ra>
